<compile_context>
chip_gen: v7x
topology: tpu7x:2x2x1
jax: 0.10.0
libtpu: 0.0.40
codegen_flags: <defaults>
</compile_context>

<pallas_src>
import functools

import jax
import jax.numpy as jnp
from jax.experimental import pallas as pl
from jax.experimental.pallas import tpu as pltpu


# ---------------------------------------------------------------------------
# Fused forward kernel (one grid step == block_b batch rows)
# ---------------------------------------------------------------------------

def _fused_forward_kernel(time_len, d_a,
                          t_ref, mask_ref, av_ref,
                          wt_ref, wconv_ref, mlpw_ref, mlpbd_ref, clsw_ref,
                          vec_ref, o_ref):
    f32 = jnp.float32
    bf16 = jnp.bfloat16

    TB, L, d_t = t_ref.shape
    Cav = av_ref.shape[2]            # d_a + d_v
    D = mlpw_ref.shape[0]            # d_common
    C = clsw_ref.shape[1]            # num_class
    M = TB * L

    # ---- packed per-lane parameters (single (8, 2D) f32 tile) ---------------
    vecs = vec_ref[...]
    conv_b = vecs[0:1]               # (1, 2D)  [conv_a_b | conv_v_b]
    ln_g = vecs[1:2]                 # (1, 2D)  [ln_a_g   | ln_v_g  ]
    ln_b = vecs[2:3]                 # (1, 2D)  [ln_a_b   | ln_v_b  ]
    mlp_b2 = vecs[3:4]               # (1, 2D)  [mlp_b    | mlp_b   ]
    mlp_b = vecs[3:4, :D]            # (1, D)
    cls_b = vecs[4:5, :C]            # (1, C)

    mask = mask_ref[...].reshape(M, 1)                               # f32 {0,1}

    # ---- text branch: W_t projection (bias=False) ---------------------------
    t2 = t_ref[...].reshape(M, d_t).astype(bf16)
    t_proj = jnp.dot(t2, wt_ref[...], preferred_element_type=f32)    # (M, D) f32

    # ---- a|v branch: masked_fill -> conv(k=3,p=1) -> LayerNorm -> ReLU ------
    av = av_ref[...].reshape(M, Cav)                                 # f32
    lane_av = jax.lax.broadcasted_iota(jnp.int32, (1, Cav), 1)
    in_a = lane_av < d_a                                             # a-half lanes
    abs_av = jnp.abs(av)
    s_a = jnp.sum(jnp.where(in_a, abs_av, 0.0), axis=-1, keepdims=True)
    s_v = jnp.sum(jnp.where(in_a, 0.0, abs_av), axis=-1, keepdims=True)
    zero_half = jnp.where(in_a, s_a, s_v) == 0.0                     # (M, Cav)
    av = jnp.where(jnp.logical_and(zero_half, mask > 0.5),
                   jnp.float32(1e-6), av)

    # im2col taps via XLU rolls; zero rows that wrapped across the time (and
    # batch-row) boundary.  shift = M-1 is the non-negative equivalent of -1.
    tpos = jax.lax.broadcasted_iota(jnp.int32, (TB, L, 1), 1).reshape(M, 1)
    tap_prev = jnp.where(tpos == 0, 0.0, pltpu.roll(av, shift=1, axis=0))
    tap_next = jnp.where(tpos == L - 1, 0.0, pltpu.roll(av, shift=M - 1, axis=0))
    cols = jnp.concatenate([tap_prev, av, tap_next], axis=-1).astype(bf16)  # (M, 3*Cav)

    # one block-diagonal MXU push covers both modalities: (M,3Cav) @ (3Cav,2D)
    y = jnp.dot(cols, wconv_ref[...], preferred_element_type=f32) + conv_b  # (M, 2D)

    # LayerNorm(eps=1e-6) per 32-lane half + ReLU, all f32
    lane2 = jax.lax.broadcasted_iota(jnp.int32, (1, 2 * D), 1)
    half_a = lane2 < D
    inv_d = 1.0 / D
    sum_a = jnp.sum(jnp.where(half_a, y, 0.0), axis=-1, keepdims=True)
    sum_v = jnp.sum(jnp.where(half_a, 0.0, y), axis=-1, keepdims=True)
    mu = jnp.where(half_a, sum_a, sum_v) * inv_d
    diff = y - mu
    d2 = diff * diff
    var_a = jnp.sum(jnp.where(half_a, d2, 0.0), axis=-1, keepdims=True)
    var_v = jnp.sum(jnp.where(half_a, 0.0, d2), axis=-1, keepdims=True)
    var = jnp.where(half_a, var_a, var_v) * inv_d
    av_enc = jnp.maximum(diff * jax.lax.rsqrt(var + 1e-6) * ln_g + ln_b, 0.0)  # (M, 2D)

    # ---- MLP stand-in (shared Linear + ReLU per modality) -------------------
    h_t = jnp.maximum(jnp.dot(t_proj.astype(bf16), mlpw_ref[...],
                              preferred_element_type=f32) + mlp_b, 0.0)      # (M, D)
    h_av = jnp.maximum(jnp.dot(av_enc.astype(bf16), mlpbd_ref[...],
                               preferred_element_type=f32) + mlp_b2, 0.0)    # (M, 2D)

    # ---- mean pool over (time_len, 3 modalities) + classifier ---------------
    sum_t = jnp.sum(h_t.reshape(TB, L, D), axis=1)                           # (TB, D)
    sum_av = jnp.sum(h_av.reshape(TB, L, 2 * D), axis=1)                     # (TB, 2D)
    # rows L..time_len-1 of every modality are zero before the MLP, so each
    # contributes relu(0 @ W + b) = relu(b) to the mean -> handled analytically
    n_zero = 3 * (time_len - L)
    pooled = (sum_t + sum_av[:, :D] + sum_av[:, D:2 * D]
              + n_zero * jnp.maximum(mlp_b, 0.0)) / (3.0 * time_len)         # (TB, D)

    logits = jnp.dot(pooled.astype(bf16), clsw_ref[...],
                     preferred_element_type=f32) + cls_b                     # (TB, C)
    o_ref[...] = logits.reshape(TB, 1, C)


# ---------------------------------------------------------------------------
# Wrapper
# ---------------------------------------------------------------------------

def init_params(key, vocab, d_t, d_a, d_v, d_common, num_class):
    ks = jax.random.split(key, 12)
    return {
        "embed":    jax.random.normal(ks[0], (vocab, d_t), jnp.float32) * 0.02,
        "W_t":      jax.random.normal(ks[1], (d_t, d_common), jnp.float32) / (d_t ** 0.5),
        "conv_a_w": jax.random.normal(ks[2], (3, d_a, d_common), jnp.float32) * 0.1,
        "conv_a_b": jax.random.normal(ks[3], (d_common,), jnp.float32) * 0.01,
        "conv_v_w": jax.random.normal(ks[4], (3, d_v, d_common), jnp.float32) * 0.1,
        "conv_v_b": jax.random.normal(ks[5], (d_common,), jnp.float32) * 0.01,
        "ln_a_g":   jnp.ones((d_common,), jnp.float32),
        "ln_a_b":   jnp.zeros((d_common,), jnp.float32),
        "ln_v_g":   jnp.ones((d_common,), jnp.float32),
        "ln_v_b":   jnp.zeros((d_common,), jnp.float32),
        "mlp_w":    jax.random.normal(ks[6], (d_common, d_common), jnp.float32) / (d_common ** 0.5),
        "mlp_b":    jax.random.normal(ks[7], (d_common,), jnp.float32) * 0.01,
        "cls_w":    jax.random.normal(ks[8], (d_common, num_class), jnp.float32) / (d_common ** 0.5),
        "cls_b":    jax.random.normal(ks[9], (num_class,), jnp.float32) * 0.01,
    }


@functools.partial(jax.jit, static_argnames=("time_len", "block_b"))
def model_forward(params, bert_sentences, bert_sentence_att_mask, a, v, *,
                  time_len, block_b=None):
    f32, bf16 = jnp.float32, jnp.bfloat16
    B, L = bert_sentences.shape
    l_av, d_a = a.shape[1], a.shape[2]
    d_v = v.shape[2]
    d_t, D = params["W_t"].shape
    C = params["cls_w"].shape[1]
    Cav = d_a + d_v

    # TODO(synk): BERT stand-in — deterministic embedding lookup (gather stays in XLA).
    t_emb = params["embed"][bert_sentences]                          # (B, L, d_t)
    mask_f = bert_sentence_att_mask.astype(f32)[..., None]           # (B, L, 1)

    # centered zero-pad of a/v to length L + lane concat, done once in XLA
    pb = (L - l_av) // 2
    pa = L - l_av - pb
    av = jnp.pad(jnp.concatenate([a, v], axis=-1), ((0, 0), (pb, pa), (0, 0)))

    # ---- weights: bf16 pre-cast + block-diagonal layouts, built once --------
    wa, wv = params["conv_a_w"], params["conv_v_w"]
    taps = []
    for k in range(3):   # rows match cols = [prev_a|prev_v | cur_a|cur_v | next_a|next_v]
        taps.append(jnp.concatenate(
            [jnp.concatenate([wa[k], jnp.zeros((d_a, D), f32)], axis=1),
             jnp.concatenate([jnp.zeros((d_v, D), f32), wv[k]], axis=1)], axis=0))
    w_conv = jnp.concatenate(taps, axis=0).astype(bf16)               # (3*Cav, 2D)

    zD = jnp.zeros((D, D), f32)
    mlp_bd = jnp.concatenate(
        [jnp.concatenate([params["mlp_w"], zD], axis=1),
         jnp.concatenate([zD, params["mlp_w"]], axis=1)], axis=0).astype(bf16)  # (2D, 2D)

    w_t = params["W_t"].astype(bf16)
    mlp_w = params["mlp_w"].astype(bf16)
    cls_w = params["cls_w"].astype(bf16)

    # ---- pack all tiny per-lane parameter vectors into one (8, 2D) tile -----
    vec = jnp.zeros((8, 2 * D), f32)
    vec = vec.at[0].set(jnp.concatenate([params["conv_a_b"], params["conv_v_b"]]))
    vec = vec.at[1].set(jnp.concatenate([params["ln_a_g"], params["ln_v_g"]]))
    vec = vec.at[2].set(jnp.concatenate([params["ln_a_b"], params["ln_v_b"]]))
    vec = vec.at[3].set(jnp.concatenate([params["mlp_b"], params["mlp_b"]]))
    vec = vec.at[4, :C].set(params["cls_b"])

    # ---- batch folding: block_b rows per grid step; default keeps 2
    #      "parallel" steps for v7x's two TensorCores (v5e/v6e: block_b=B) ----
    if block_b is None:
        block_b = max(1, pl.cdiv(B, 2))
    num_steps = pl.cdiv(B, block_b)
    Bp = num_steps * block_b
    if Bp != B:
        padb = ((0, Bp - B), (0, 0), (0, 0))
        t_emb = jnp.pad(t_emb, padb)
        mask_f = jnp.pad(mask_f, padb)
        av = jnp.pad(av, padb)
    TB = block_b

    flops = Bp * L * (2 * d_t * D + 2 * (3 * Cav) * (2 * D)
                      + 2 * D * D + 2 * (2 * D) * (2 * D)) + Bp * 2 * D * C
    bytes_accessed = (4 * (t_emb.size + mask_f.size + av.size + vec.size + Bp * C)
                      + 2 * (w_t.size + w_conv.size + mlp_w.size
                             + mlp_bd.size + cls_w.size))

    kernel = functools.partial(_fused_forward_kernel, time_len, d_a)

    out = pl.pallas_call(
        kernel,
        out_shape=jax.ShapeDtypeStruct((Bp, 1, C), f32),
        grid=(num_steps,),
        in_specs=[
            pl.BlockSpec((TB, L, d_t), lambda g: (g, 0, 0)),         # t_emb
            pl.BlockSpec((TB, L, 1), lambda g: (g, 0, 0)),           # text mask
            pl.BlockSpec((TB, L, Cav), lambda g: (g, 0, 0)),         # [a | v]
            pl.BlockSpec((d_t, D), lambda g: (0, 0)),                # W_t (bf16)
            pl.BlockSpec((3 * Cav, 2 * D), lambda g: (0, 0)),        # conv blockdiag (bf16)
            pl.BlockSpec((D, D), lambda g: (0, 0)),                  # mlp_w (bf16)
            pl.BlockSpec((2 * D, 2 * D), lambda g: (0, 0)),          # blockdiag(mlp_w) (bf16)
            pl.BlockSpec((D, C), lambda g: (0, 0)),                  # cls_w (bf16)
            pl.BlockSpec((8, 2 * D), lambda g: (0, 0)),              # packed bias/LN vectors
        ],
        out_specs=pl.BlockSpec((TB, 1, C), lambda g: (g, 0, 0)),
        compiler_params=pltpu.CompilerParams(
            dimension_semantics=("parallel",)),
        cost_estimate=pl.CostEstimate(flops=flops,
                                      transcendentals=2 * Bp * L,
                                      bytes_accessed=bytes_accessed),
    )(t_emb, mask_f, av, w_t, w_conv, mlp_w, mlp_bd, cls_w, vec)
    return out.reshape(Bp, C)[:B]


# ---------------------------------------------------------------------------
# Pure-JAX reference (f32) for a sanity check
# ---------------------------------------------------------------------------

def reference_forward(params, bert_sentences, mask, a, v, *, time_len):
    B, L = bert_sentences.shape
    l_av = a.shape[1]
    t = params["embed"][bert_sentences] @ params["W_t"]
    pb = (L - l_av) // 2
    pa = L - l_av - pb
    a = jnp.pad(a, ((0, 0), (pb, pa), (0, 0)))
    v = jnp.pad(v, ((0, 0), (pb, pa), (0, 0)))
    a_fill = (jnp.sum(jnp.abs(a), -1) == 0) & (mask == 1)
    v_fill = (jnp.sum(jnp.abs(v), -1) == 0) & (mask == 1)
    a = jnp.where(a_fill[..., None], 1e-6, a)
    v = jnp.where(v_fill[..., None], 1e-6, v)

    def conv_ln_relu(x, w, b, g, beta):
        xp = jnp.pad(x, ((0, 0), (1, 1), (0, 0)))
        y = (xp[:, 0:L] @ w[0] + xp[:, 1:L + 1] @ w[1] + xp[:, 2:L + 2] @ w[2] + b)
        mu = y.mean(-1, keepdims=True)
        var = ((y - mu) ** 2).mean(-1, keepdims=True)
        return jnp.maximum((y - mu) * jax.lax.rsqrt(var + 1e-6) * g + beta, 0.0)

    a = conv_ln_relu(a, params["conv_a_w"], params["conv_a_b"],
                     params["ln_a_g"], params["ln_a_b"])
    v = conv_ln_relu(v, params["conv_v_w"], params["conv_v_b"],
                     params["ln_v_g"], params["ln_v_b"])
    pad_t = ((0, 0), (0, time_len - L), (0, 0))
    x = jnp.stack([jnp.pad(t, pad_t), jnp.pad(a, pad_t), jnp.pad(v, pad_t)], axis=2)
    x = jnp.maximum(x @ params["mlp_w"] + params["mlp_b"], 0.0)
    fused = x.mean(axis=1).mean(axis=1)
    return fused @ params["cls_w"] + params["cls_b"]


# ---------------------------------------------------------------------------
# Main
# ---------------------------------------------------------------------------

if __name__ == "__main__":
    B, L, l_av = 2, 16, 12
    d_t, d_a, d_v, d_common = 32, 16, 16, 32
    time_len, num_class, vocab = 24, 4, 64

    root = jax.random.PRNGKey(0)
    k_par, k_tok, k_a, k_v = jax.random.split(root, 4)

    params = init_params(k_par, vocab, d_t, d_a, d_v, d_common, num_class)

    bert_sentences = jax.random.randint(k_tok, (B, L), 0, vocab, dtype=jnp.int32)
    lengths = jnp.array([12, 10], dtype=jnp.int32)
    bert_att_mask = (jnp.arange(L)[None, :] < lengths[:, None]).astype(jnp.int32)

    a = jax.random.normal(k_a, (B, l_av, d_a), jnp.float32)
    v = jax.random.normal(k_v, (B, l_av, d_v), jnp.float32)
    # simulate zero-padded trailing audio/video timesteps so masked_fill does work
    av_valid = (jnp.arange(l_av)[None, :, None] < 10).astype(jnp.float32)
    a = a * av_valid
    v = v * av_valid

    out = model_forward(params, bert_sentences, bert_att_mask, a, v, time_len=time_len)
    out = jax.block_until_ready(out)
    ref = reference_forward(params, bert_sentences, bert_att_mask, a, v, time_len=time_len)

    assert out.shape == (B, num_class)
    assert jnp.all(jnp.isfinite(out))
    # bf16 MXU operands vs f32 reference -> generous tolerance
    assert jnp.allclose(out, ref, atol=0.1, rtol=0.1)
    print("KERNEL_OK")
</pallas_src>

<mosaic_0001>
module attributes {stable_mosaic.version = 11 : i64} {
  func.func @_fused_forward_kernel(%arg0: i32, %arg1: memref<1x16x32xf32, #tpu.memory_space<vmem>>, %arg2: memref<1x16x1xf32, #tpu.memory_space<vmem>>, %arg3: memref<1x16x32xf32, #tpu.memory_space<vmem>>, %arg4: memref<32x32xbf16, #tpu.memory_space<vmem>>, %arg5: memref<96x64xbf16, #tpu.memory_space<vmem>>, %arg6: memref<32x32xbf16, #tpu.memory_space<vmem>>, %arg7: memref<64x64xbf16, #tpu.memory_space<vmem>>, %arg8: memref<32x4xbf16, #tpu.memory_space<vmem>>, %arg9: memref<8x64xf32, #tpu.memory_space<vmem>>, %arg10: memref<1x1x4xf32, #tpu.memory_space<vmem>>) attributes {dimension_semantics = [#tpu.dimension_semantics<parallel>], iteration_bounds = array<i64: 2>, scalar_prefetch = 0 : i64, scratch_operands = 0 : i64, tpu.core_type = #tpu.core_type<tc>, window_params = [{transform_indices = @transform_0, window_bounds = array<i64: 1, 16, 32>}, {transform_indices = @transform_1, window_bounds = array<i64: 1, 16, 1>}, {transform_indices = @transform_2, window_bounds = array<i64: 1, 16, 32>}, {pipeline_mode = #tpu.pipeline_mode<synchronous>, transform_indices = @transform_3, window_bounds = array<i64: 32, 32>}, {pipeline_mode = #tpu.pipeline_mode<synchronous>, transform_indices = @transform_4, window_bounds = array<i64: 96, 64>}, {pipeline_mode = #tpu.pipeline_mode<synchronous>, transform_indices = @transform_5, window_bounds = array<i64: 32, 32>}, {pipeline_mode = #tpu.pipeline_mode<synchronous>, transform_indices = @transform_6, window_bounds = array<i64: 64, 64>}, {pipeline_mode = #tpu.pipeline_mode<synchronous>, transform_indices = @transform_7, window_bounds = array<i64: 32, 4>}, {pipeline_mode = #tpu.pipeline_mode<synchronous>, transform_indices = @transform_8, window_bounds = array<i64: 8, 64>}, {transform_indices = @transform_9, window_bounds = array<i64: 1, 1, 4>}]} {
    %c0 = arith.constant 0 : index
    %c0_0 = arith.constant 0 : index
    %0 = vector.load %arg9[%c0, %c0_0] : memref<8x64xf32, #tpu.memory_space<vmem>>, vector<8x64xf32>
    %1 = vector.extract_strided_slice %0 {offsets = [0, 0], sizes = [1, 64], strides = [1, 1]} : vector<8x64xf32> to vector<1x64xf32>
    %2 = vector.extract_strided_slice %0 {offsets = [1, 0], sizes = [1, 64], strides = [1, 1]} : vector<8x64xf32> to vector<1x64xf32>
    %3 = vector.extract_strided_slice %0 {offsets = [2, 0], sizes = [1, 64], strides = [1, 1]} : vector<8x64xf32> to vector<1x64xf32>
    %4 = vector.extract_strided_slice %0 {offsets = [3, 0], sizes = [1, 64], strides = [1, 1]} : vector<8x64xf32> to vector<1x64xf32>
    %5 = vector.extract_strided_slice %0 {offsets = [3, 0], sizes = [1, 32], strides = [1, 1]} : vector<8x64xf32> to vector<1x32xf32>
    %6 = vector.extract_strided_slice %0 {offsets = [4, 0], sizes = [1, 4], strides = [1, 1]} : vector<8x64xf32> to vector<1x4xf32>
    %c0_1 = arith.constant 0 : index
    %c0_2 = arith.constant 0 : index
    %c0_3 = arith.constant 0 : index
    %7 = vector.load %arg2[%c0_1, %c0_2, %c0_3] : memref<1x16x1xf32, #tpu.memory_space<vmem>>, vector<1x16x1xf32>
    %8 = vector.shape_cast %7 : vector<1x16x1xf32> to vector<16x1xf32>
    %c0_4 = arith.constant 0 : index
    %c0_5 = arith.constant 0 : index
    %c0_6 = arith.constant 0 : index
    %9 = vector.load %arg1[%c0_4, %c0_5, %c0_6] : memref<1x16x32xf32, #tpu.memory_space<vmem>>, vector<1x16x32xf32>
    %10 = vector.shape_cast %9 : vector<1x16x32xf32> to vector<16x32xf32>
    %11 = arith.truncf %10 : vector<16x32xf32> to vector<16x32xbf16>
    %c0_7 = arith.constant 0 : index
    %c0_8 = arith.constant 0 : index
    %12 = vector.load %arg4[%c0_7, %c0_8] : memref<32x32xbf16, #tpu.memory_space<vmem>>, vector<32x32xbf16>
    %cst = arith.constant dense<0.000000e+00> : vector<16x32xf32>
    %13 = tpu.matmul %11, %12, %cst {dimension_numbers = #tpu.dot_dimension_numbers<[1], [0], [0], [1], [0, 0, 1, 1], [], []>} : vector<16x32xbf16>, vector<32x32xbf16>, vector<16x32xf32> -> vector<16x32xf32>
    %c0_9 = arith.constant 0 : index
    %c0_10 = arith.constant 0 : index
    %c0_11 = arith.constant 0 : index
    %14 = vector.load %arg3[%c0_9, %c0_10, %c0_11] : memref<1x16x32xf32, #tpu.memory_space<vmem>>, vector<1x16x32xf32>
    %15 = vector.shape_cast %14 : vector<1x16x32xf32> to vector<16x32xf32>
    %16 = tpu.iota {dimensions = array<i32: 1>} : vector<1x32xi32>
    %c16_i32 = arith.constant 16 : i32
    %17 = vector.broadcast %c16_i32 : i32 to vector<1x32xi32>
    %18 = arith.cmpi slt, %16, %17 : vector<1x32xi32>
    %19 = math.absf %15 : vector<16x32xf32>
    %cst_12 = arith.constant 0.000000e+00 : f32
    %20 = vector.shape_cast %18 : vector<1x32xi1> to vector<1x32xi1>
    %21 = vector.broadcast %20 : vector<1x32xi1> to vector<16x32xi1>
    %22 = vector.broadcast %cst_12 : f32 to vector<16x32xf32>
    %23 = arith.select %21, %19, %22 : vector<16x32xi1>, vector<16x32xf32>
    %cst_13 = arith.constant dense<0.000000e+00> : vector<16xf32>
    %24 = vector.multi_reduction <add>, %23, %cst_13 [1] : vector<16x32xf32> to vector<16xf32>
    %25 = vector.shape_cast %24 : vector<16xf32> to vector<16x1xf32>
    %cst_14 = arith.constant 0.000000e+00 : f32
    %26 = vector.shape_cast %18 : vector<1x32xi1> to vector<1x32xi1>
    %27 = vector.broadcast %26 : vector<1x32xi1> to vector<16x32xi1>
    %28 = vector.broadcast %cst_14 : f32 to vector<16x32xf32>
    %29 = arith.select %27, %28, %19 : vector<16x32xi1>, vector<16x32xf32>
    %cst_15 = arith.constant dense<0.000000e+00> : vector<16xf32>
    %30 = vector.multi_reduction <add>, %29, %cst_15 [1] : vector<16x32xf32> to vector<16xf32>
    %31 = vector.shape_cast %30 : vector<16xf32> to vector<16x1xf32>
    %32 = vector.shape_cast %18 : vector<1x32xi1> to vector<1x32xi1>
    %33 = vector.broadcast %32 : vector<1x32xi1> to vector<16x32xi1>
    %34 = vector.shape_cast %25 : vector<16x1xf32> to vector<16x1xf32>
    %35 = vector.broadcast %34 : vector<16x1xf32> to vector<16x32xf32>
    %36 = vector.shape_cast %31 : vector<16x1xf32> to vector<16x1xf32>
    %37 = vector.broadcast %36 : vector<16x1xf32> to vector<16x32xf32>
    %38 = arith.select %33, %35, %37 : vector<16x32xi1>, vector<16x32xf32>
    %cst_16 = arith.constant 0.000000e+00 : f32
    %39 = vector.broadcast %cst_16 : f32 to vector<16x32xf32>
    %40 = arith.cmpf oeq, %38, %39 : vector<16x32xf32>
    %cst_17 = arith.constant 5.000000e-01 : f32
    %41 = vector.broadcast %cst_17 : f32 to vector<16x1xf32>
    %42 = arith.cmpf ogt, %8, %41 : vector<16x1xf32>
    %43 = vector.broadcast %42 : vector<16x1xi1> to vector<16x32xi1>
    %44 = arith.andi %40, %43 : vector<16x32xi1>
    %cst_18 = arith.constant 9.99999997E-7 : f32
    %45 = vector.broadcast %cst_18 : f32 to vector<16x32xf32>
    %46 = arith.select %44, %45, %15 : vector<16x32xi1>, vector<16x32xf32>
    %47 = tpu.iota {dimensions = array<i32: 1>} : vector<1x16x1xi32>
    %48 = vector.shape_cast %47 : vector<1x16x1xi32> to vector<16x1xi32>
    %c0_i32 = arith.constant 0 : i32
    %49 = vector.broadcast %c0_i32 : i32 to vector<16x1xi32>
    %50 = arith.cmpi eq, %48, %49 : vector<16x1xi32>
    %c1_i32 = arith.constant 1 : i32
    %51 = tpu.dynamic_rotate %46 by %c1_i32 dim 0 : vector<16x32xf32>, i32 -> vector<16x32xf32>
    %cst_19 = arith.constant 0.000000e+00 : f32
    %52 = vector.shape_cast %50 : vector<16x1xi1> to vector<16x1xi1>
    %53 = vector.broadcast %52 : vector<16x1xi1> to vector<16x32xi1>
    %54 = vector.broadcast %cst_19 : f32 to vector<16x32xf32>
    %55 = arith.select %53, %54, %51 : vector<16x32xi1>, vector<16x32xf32>
    %c15_i32 = arith.constant 15 : i32
    %56 = vector.broadcast %c15_i32 : i32 to vector<16x1xi32>
    %57 = arith.cmpi eq, %48, %56 : vector<16x1xi32>
    %c15_i32_20 = arith.constant 15 : i32
    %58 = tpu.dynamic_rotate %46 by %c15_i32_20 dim 0 : vector<16x32xf32>, i32 -> vector<16x32xf32>
    %cst_21 = arith.constant 0.000000e+00 : f32
    %59 = vector.shape_cast %57 : vector<16x1xi1> to vector<16x1xi1>
    %60 = vector.broadcast %59 : vector<16x1xi1> to vector<16x32xi1>
    %61 = vector.broadcast %cst_21 : f32 to vector<16x32xf32>
    %62 = arith.select %60, %61, %58 : vector<16x32xi1>, vector<16x32xf32>
    %63 = tpu.concatenate %55, %46, %62 in 1 : vector<16x32xf32>, vector<16x32xf32>, vector<16x32xf32> -> vector<16x96xf32>
    %64 = arith.truncf %63 : vector<16x96xf32> to vector<16x96xbf16>
    %c0_22 = arith.constant 0 : index
    %c0_23 = arith.constant 0 : index
    %65 = vector.load %arg5[%c0_22, %c0_23] : memref<96x64xbf16, #tpu.memory_space<vmem>>, vector<96x64xbf16>
    %cst_24 = arith.constant dense<0.000000e+00> : vector<16x64xf32>
    %66 = tpu.matmul %64, %65, %cst_24 {dimension_numbers = #tpu.dot_dimension_numbers<[1], [0], [0], [1], [0, 0, 1, 1], [], []>} : vector<16x96xbf16>, vector<96x64xbf16>, vector<16x64xf32> -> vector<16x64xf32>
    %67 = vector.broadcast %1 : vector<1x64xf32> to vector<16x64xf32>
    %68 = arith.addf %66, %67 : vector<16x64xf32>
    %69 = tpu.iota {dimensions = array<i32: 1>} : vector<1x64xi32>
    %c32_i32 = arith.constant 32 : i32
    %70 = vector.broadcast %c32_i32 : i32 to vector<1x64xi32>
    %71 = arith.cmpi slt, %69, %70 : vector<1x64xi32>
    %cst_25 = arith.constant 0.000000e+00 : f32
    %72 = vector.shape_cast %71 : vector<1x64xi1> to vector<1x64xi1>
    %73 = vector.broadcast %72 : vector<1x64xi1> to vector<16x64xi1>
    %74 = vector.broadcast %cst_25 : f32 to vector<16x64xf32>
    %75 = arith.select %73, %68, %74 : vector<16x64xi1>, vector<16x64xf32>
    %cst_26 = arith.constant dense<0.000000e+00> : vector<16xf32>
    %76 = vector.multi_reduction <add>, %75, %cst_26 [1] : vector<16x64xf32> to vector<16xf32>
    %77 = vector.shape_cast %76 : vector<16xf32> to vector<16x1xf32>
    %cst_27 = arith.constant 0.000000e+00 : f32
    %78 = vector.shape_cast %71 : vector<1x64xi1> to vector<1x64xi1>
    %79 = vector.broadcast %78 : vector<1x64xi1> to vector<16x64xi1>
    %80 = vector.broadcast %cst_27 : f32 to vector<16x64xf32>
    %81 = arith.select %79, %80, %68 : vector<16x64xi1>, vector<16x64xf32>
    %cst_28 = arith.constant dense<0.000000e+00> : vector<16xf32>
    %82 = vector.multi_reduction <add>, %81, %cst_28 [1] : vector<16x64xf32> to vector<16xf32>
    %83 = vector.shape_cast %82 : vector<16xf32> to vector<16x1xf32>
    %84 = vector.shape_cast %71 : vector<1x64xi1> to vector<1x64xi1>
    %85 = vector.broadcast %84 : vector<1x64xi1> to vector<16x64xi1>
    %86 = vector.shape_cast %77 : vector<16x1xf32> to vector<16x1xf32>
    %87 = vector.broadcast %86 : vector<16x1xf32> to vector<16x64xf32>
    %88 = vector.shape_cast %83 : vector<16x1xf32> to vector<16x1xf32>
    %89 = vector.broadcast %88 : vector<16x1xf32> to vector<16x64xf32>
    %90 = arith.select %85, %87, %89 : vector<16x64xi1>, vector<16x64xf32>
    %cst_29 = arith.constant 3.125000e-02 : f32
    %91 = vector.broadcast %cst_29 : f32 to vector<16x64xf32>
    %92 = arith.mulf %90, %91 : vector<16x64xf32>
    %93 = arith.subf %68, %92 : vector<16x64xf32>
    %94 = arith.mulf %93, %93 : vector<16x64xf32>
    %cst_30 = arith.constant 0.000000e+00 : f32
    %95 = vector.shape_cast %71 : vector<1x64xi1> to vector<1x64xi1>
    %96 = vector.broadcast %95 : vector<1x64xi1> to vector<16x64xi1>
    %97 = vector.broadcast %cst_30 : f32 to vector<16x64xf32>
    %98 = arith.select %96, %94, %97 : vector<16x64xi1>, vector<16x64xf32>
    %cst_31 = arith.constant dense<0.000000e+00> : vector<16xf32>
    %99 = vector.multi_reduction <add>, %98, %cst_31 [1] : vector<16x64xf32> to vector<16xf32>
    %100 = vector.shape_cast %99 : vector<16xf32> to vector<16x1xf32>
    %cst_32 = arith.constant 0.000000e+00 : f32
    %101 = vector.shape_cast %71 : vector<1x64xi1> to vector<1x64xi1>
    %102 = vector.broadcast %101 : vector<1x64xi1> to vector<16x64xi1>
    %103 = vector.broadcast %cst_32 : f32 to vector<16x64xf32>
    %104 = arith.select %102, %103, %94 : vector<16x64xi1>, vector<16x64xf32>
    %cst_33 = arith.constant dense<0.000000e+00> : vector<16xf32>
    %105 = vector.multi_reduction <add>, %104, %cst_33 [1] : vector<16x64xf32> to vector<16xf32>
    %106 = vector.shape_cast %105 : vector<16xf32> to vector<16x1xf32>
    %107 = vector.shape_cast %71 : vector<1x64xi1> to vector<1x64xi1>
    %108 = vector.broadcast %107 : vector<1x64xi1> to vector<16x64xi1>
    %109 = vector.shape_cast %100 : vector<16x1xf32> to vector<16x1xf32>
    %110 = vector.broadcast %109 : vector<16x1xf32> to vector<16x64xf32>
    %111 = vector.shape_cast %106 : vector<16x1xf32> to vector<16x1xf32>
    %112 = vector.broadcast %111 : vector<16x1xf32> to vector<16x64xf32>
    %113 = arith.select %108, %110, %112 : vector<16x64xi1>, vector<16x64xf32>
    %cst_34 = arith.constant 3.125000e-02 : f32
    %114 = vector.broadcast %cst_34 : f32 to vector<16x64xf32>
    %115 = arith.mulf %113, %114 : vector<16x64xf32>
    %cst_35 = arith.constant 9.99999997E-7 : f32
    %116 = vector.broadcast %cst_35 : f32 to vector<16x64xf32>
    %117 = arith.addf %115, %116 : vector<16x64xf32>
    %118 = math.rsqrt %117 : vector<16x64xf32>
    %119 = arith.mulf %93, %118 : vector<16x64xf32>
    %120 = vector.broadcast %2 : vector<1x64xf32> to vector<16x64xf32>
    %121 = arith.mulf %119, %120 : vector<16x64xf32>
    %122 = vector.broadcast %3 : vector<1x64xf32> to vector<16x64xf32>
    %123 = arith.addf %121, %122 : vector<16x64xf32>
    %cst_36 = arith.constant 0.000000e+00 : f32
    %124 = vector.broadcast %cst_36 : f32 to vector<16x64xf32>
    %125 = arith.maximumf %123, %124 : vector<16x64xf32>
    %126 = arith.truncf %13 : vector<16x32xf32> to vector<16x32xbf16>
    %c0_37 = arith.constant 0 : index
    %c0_38 = arith.constant 0 : index
    %127 = vector.load %arg6[%c0_37, %c0_38] : memref<32x32xbf16, #tpu.memory_space<vmem>>, vector<32x32xbf16>
    %cst_39 = arith.constant dense<0.000000e+00> : vector<16x32xf32>
    %128 = tpu.matmul %126, %127, %cst_39 {dimension_numbers = #tpu.dot_dimension_numbers<[1], [0], [0], [1], [0, 0, 1, 1], [], []>} : vector<16x32xbf16>, vector<32x32xbf16>, vector<16x32xf32> -> vector<16x32xf32>
    %129 = vector.broadcast %5 : vector<1x32xf32> to vector<16x32xf32>
    %130 = arith.addf %128, %129 : vector<16x32xf32>
    %cst_40 = arith.constant 0.000000e+00 : f32
    %131 = vector.broadcast %cst_40 : f32 to vector<16x32xf32>
    %132 = arith.maximumf %130, %131 : vector<16x32xf32>
    %133 = arith.truncf %125 : vector<16x64xf32> to vector<16x64xbf16>
    %c0_41 = arith.constant 0 : index
    %c0_42 = arith.constant 0 : index
    %134 = vector.load %arg7[%c0_41, %c0_42] : memref<64x64xbf16, #tpu.memory_space<vmem>>, vector<64x64xbf16>
    %cst_43 = arith.constant dense<0.000000e+00> : vector<16x64xf32>
    %135 = tpu.matmul %133, %134, %cst_43 {dimension_numbers = #tpu.dot_dimension_numbers<[1], [0], [0], [1], [0, 0, 1, 1], [], []>} : vector<16x64xbf16>, vector<64x64xbf16>, vector<16x64xf32> -> vector<16x64xf32>
    %136 = vector.broadcast %4 : vector<1x64xf32> to vector<16x64xf32>
    %137 = arith.addf %135, %136 : vector<16x64xf32>
    %cst_44 = arith.constant 0.000000e+00 : f32
    %138 = vector.broadcast %cst_44 : f32 to vector<16x64xf32>
    %139 = arith.maximumf %137, %138 : vector<16x64xf32>
    %140 = vector.shape_cast %132 : vector<16x32xf32> to vector<1x16x32xf32>
    %cst_45 = arith.constant dense<0.000000e+00> : vector<1x32xf32>
    %141 = vector.multi_reduction <add>, %140, %cst_45 [1] : vector<1x16x32xf32> to vector<1x32xf32>
    %142 = vector.shape_cast %139 : vector<16x64xf32> to vector<1x16x64xf32>
    %cst_46 = arith.constant dense<0.000000e+00> : vector<1x64xf32>
    %143 = vector.multi_reduction <add>, %142, %cst_46 [1] : vector<1x16x64xf32> to vector<1x64xf32>
    %144 = vector.extract_strided_slice %143 {offsets = [0, 0], sizes = [1, 32], strides = [1, 1]} : vector<1x64xf32> to vector<1x32xf32>
    %145 = arith.addf %141, %144 : vector<1x32xf32>
    %146 = vector.extract_strided_slice %143 {offsets = [0, 32], sizes = [1, 32], strides = [1, 1]} : vector<1x64xf32> to vector<1x32xf32>
    %147 = arith.addf %145, %146 : vector<1x32xf32>
    %cst_47 = arith.constant 0.000000e+00 : f32
    %148 = vector.broadcast %cst_47 : f32 to vector<1x32xf32>
    %149 = arith.maximumf %5, %148 : vector<1x32xf32>
    %cst_48 = arith.constant 2.400000e+01 : f32
    %150 = vector.broadcast %cst_48 : f32 to vector<1x32xf32>
    %151 = arith.mulf %150, %149 : vector<1x32xf32>
    %152 = arith.addf %147, %151 : vector<1x32xf32>
    %cst_49 = arith.constant 7.200000e+01 : f32
    %153 = vector.broadcast %cst_49 : f32 to vector<1x32xf32>
    %154 = arith.divf %152, %153 : vector<1x32xf32>
    %155 = arith.truncf %154 : vector<1x32xf32> to vector<1x32xbf16>
    %c0_50 = arith.constant 0 : index
    %c0_51 = arith.constant 0 : index
    %156 = vector.load %arg8[%c0_50, %c0_51] : memref<32x4xbf16, #tpu.memory_space<vmem>>, vector<32x4xbf16>
    %cst_52 = arith.constant dense<0.000000e+00> : vector<1x4xf32>
    %157 = tpu.matmul %155, %156, %cst_52 {dimension_numbers = #tpu.dot_dimension_numbers<[1], [0], [0], [1], [0, 0, 1, 1], [], []>} : vector<1x32xbf16>, vector<32x4xbf16>, vector<1x4xf32> -> vector<1x4xf32>
    %158 = arith.addf %157, %6 : vector<1x4xf32>
    %159 = vector.shape_cast %158 : vector<1x4xf32> to vector<1x1x4xf32>
    %c0_53 = arith.constant 0 : index
    %c0_54 = arith.constant 0 : index
    %c0_55 = arith.constant 0 : index
    %160 = vector.load %arg10[%c0_53, %c0_54, %c0_55] : memref<1x1x4xf32, #tpu.memory_space<vmem>>, vector<1x1x4xf32>
    tpu.vector_store %arg10[%c0_53, %c0_54, %c0_55], %159 {strides = array<i32>} : memref<1x1x4xf32, #tpu.memory_space<vmem>>, vector<1x1x4xf32>,
    return
  }
  func.func @transform_0(%arg0: i32) -> (i32, i32, i32) {
    %c0_i32 = arith.constant 0 : i32
    %c0_i32_0 = arith.constant 0 : i32
    %c0_i32_1 = arith.constant 0 : i32
    return %arg0, %c0_i32, %c0_i32_0 : i32, i32, i32
  }
  func.func @transform_1(%arg0: i32) -> (i32, i32, i32) {
    %c0_i32 = arith.constant 0 : i32
    %c0_i32_0 = arith.constant 0 : i32
    %c0_i32_1 = arith.constant 0 : i32
    return %arg0, %c0_i32, %c0_i32_0 : i32, i32, i32
  }
  func.func @transform_2(%arg0: i32) -> (i32, i32, i32) {
    %c0_i32 = arith.constant 0 : i32
    %c0_i32_0 = arith.constant 0 : i32
    %c0_i32_1 = arith.constant 0 : i32
    return %arg0, %c0_i32, %c0_i32_0 : i32, i32, i32
  }
  func.func @transform_3(%arg0: i32) -> (i32, i32) {
    %c0_i32 = arith.constant 0 : i32
    %c0_i32_0 = arith.constant 0 : i32
    %c0_i32_1 = arith.constant 0 : i32
    return %c0_i32, %c0_i32_0 : i32, i32
  }
  func.func @transform_4(%arg0: i32) -> (i32, i32) {
    %c0_i32 = arith.constant 0 : i32
    %c0_i32_0 = arith.constant 0 : i32
    %c0_i32_1 = arith.constant 0 : i32
    return %c0_i32, %c0_i32_0 : i32, i32
  }
  func.func @transform_5(%arg0: i32) -> (i32, i32) {
    %c0_i32 = arith.constant 0 : i32
    %c0_i32_0 = arith.constant 0 : i32
    %c0_i32_1 = arith.constant 0 : i32
    return %c0_i32, %c0_i32_0 : i32, i32
  }
  func.func @transform_6(%arg0: i32) -> (i32, i32) {
    %c0_i32 = arith.constant 0 : i32
    %c0_i32_0 = arith.constant 0 : i32
    %c0_i32_1 = arith.constant 0 : i32
    return %c0_i32, %c0_i32_0 : i32, i32
  }
  func.func @transform_7(%arg0: i32) -> (i32, i32) {
    %c0_i32 = arith.constant 0 : i32
    %c0_i32_0 = arith.constant 0 : i32
    %c0_i32_1 = arith.constant 0 : i32
    return %c0_i32, %c0_i32_0 : i32, i32
  }
  func.func @transform_8(%arg0: i32) -> (i32, i32) {
    %c0_i32 = arith.constant 0 : i32
    %c0_i32_0 = arith.constant 0 : i32
    %c0_i32_1 = arith.constant 0 : i32
    return %c0_i32, %c0_i32_0 : i32, i32
  }
  func.func @transform_9(%arg0: i32) -> (i32, i32, i32) {
    %c0_i32 = arith.constant 0 : i32
    %c0_i32_0 = arith.constant 0 : i32
    %c0_i32_1 = arith.constant 0 : i32
    return %arg0, %c0_i32, %c0_i32_0 : i32, i32, i32
  }
}

</mosaic_0001>

<bundles_post_ra>
// kernel: model_forward.1
= control target key start
LH: loop header
LB: loop body
LE: loop exit
PB: predicated region body
PF: predicated region fallthrough
CT: control target
= control target key end

     0   :  { %14 = vsyncpa [#allocation3], 0  ;;  %s1615_s0 = inlined_call_operand.vmem [shape: f32[2,16,32], index: 0, kind: input, shape index: {}]   ;;  %s1616_s1 = inlined_call_operand.vmem [shape: f32[2,16,1], index: 1, kind: input, shape index: {}]   ;;  %s1617_s2 = inlined_call_operand.vmem [shape: f32[2,16,32], index: 2, kind: input, shape index: {}]   ;;  %s1618_s3 = inlined_call_operand.vmem [shape: bf16[32,32], index: 3, kind: input, shape index: {}]   ;;  %s1619_s4 = inlined_call_operand.vmem [shape: bf16[96,64], index: 4, kind: input, shape index: {}]   ;;  %s1620_s5 = inlined_call_operand.vmem [shape: bf16[32,32], index: 5, kind: input, shape index: {}]   ;;  %s1621_s6 = inlined_call_operand.vmem [shape: bf16[64,64], index: 6, kind: input, shape index: {}]   ;;  %s1622_s7 = inlined_call_operand.vmem [shape: bf16[32,4], index: 7, kind: input, shape index: {}]   ;;  %s1623_s8 = inlined_call_operand.vmem [shape: f32[8,64], index: 8, kind: input, shape index: {}]   ;;  %s1624_s9 = inlined_call_operand.hbm [shape: f32[2,1,4], index: 9, kind: output, shape index: {}]  }
   0x1   :  { %16 = vsyncpa [#allocation3 + $0x1], 0  ;;  %s1341_s30 = smov 0   ;;  %s1343_s10 = smov 0  }
   0x2   :  { %s1345_s11 = smov 0   ;;  %s1347_s12 = smov 0  }
   0x3 LB: > { %s1362_s13 = sadd.s32 4294967295, %s1282_s12   ;;  %s1033_s14 = sadd.s32 4294967294, %s1282_s12   ;;  %s1282_s12 = sphi %s1347_s12, %s1630_s12   ;;  %s1278_s11 = sphi %s1345_s11, %s1629_s11   ;;  %s1274_s10 = sphi %s1343_s10, %s1628_s10   ;;  %s1270_s30 = sphi %s1341_s30, %s1627_s30  }
   0x4   : > { %s1366_s15 = sadd.s32 1, %s1282_s12   ;;  %s233_s16 = sadd.s32 1, %s1278_s11 }
   0x5   : > { %s230_s17 = ssub.s32 %s1282_s12, %s1366_s15  ;;  %p243_p0 = scmp.ne.s32.totalorder %s1278_s11, %s1274_s10 }
   0x6   : > { %p231_p1 = scmp.eq.s32.totalorder %s230_s17, 0  ;;  %p244_p2 = scmp.eq.s32.totalorder %s1362_s13, 1 }
   0x7   : > { %p249_p3 = scmp.ne.s32.totalorder %s1274_s10, %s1270_s30  ;;  %p250_p4 = scmp.eq.s32.totalorder %s1033_s14, 1 }
   0x8   : > { %s1377_s18 = scalar_select %p231_p1, %s1278_s11, %s233_s16  }
   0x9   : > { %p1379_p5 = por %p244_p2, %p243_p0  ;;  %p1383_p6 = por %p250_p4, %p249_p3 }
   0xa   : > { %p1036_p7 = scmp.ge.s32.totalorder %s1282_s12, 1  ;;  %p310_p8 = scmp.lt.s32.totalorder %s1282_s12, 3 }
   0xc   : > { %p311_p9 = pnand %p1036_p7, %p310_p8 }
   0xd   : > { %p355_p10 = scmp.lt.s32.totalorder (!%p311_p9), %s1362_s13, 1  ;;  %v440_v0 = vlaneseq (!%p311_p9)  ;;  %v1284_v1 = vmov (!%p311_p9), 0   ;;  %vm393_vm1 = vcmask (!%p311_p9), 261120   ;;  %v1200_v19 = vld [vmem:[%s1619_s4] sm:$0xff] (!%p311_p9)   ;;  %v1285_v20 = vmov (!%p311_p9), 0.0   ;;  %v1201_v21 = vld [vmem:[%s1619_s4 + $0x8] sm:$0xff] (!%p311_p9)  }
   0xe   : > { %314 = sbr.rel (%p311_p9) target bundleno = 1444 (0x5a4), region = 56  ;;  %1189 = vset.pattern.permute.xlu1 (!%p311_p9), %v1284_v1  ;;  %1188 = vset.pattern.permute.xlu0 (!%p311_p9), %v1284_v1  ;;  %v1202_v22 = vld [vmem:[%s1619_s4 + $0x10] sm:$0xff] (!%p311_p9)   ;;  %v1203_v23 = vld [vmem:[%s1619_s4 + $0x18] sm:$0xff] (!%p311_p9)   ;;  %v1204_v28 = vld [vmem:[%s1619_s4 + $0x20] sm:$0xff] (!%p311_p9)   ;;  %vm1286_vm9 = vmmov (!%p311_p9), 0   ;;  %s1287_s14 = smov (!%p311_p9), 32  }
   0xf   : > { %v1391_v2 = vand.u32 (!%p311_p9), 127, %v440_v0  ;;  %1099 = vmatprep.subr.bf16.mxu1 (!%p311_p9), %v1285_v20  ;;  %1091 = vmatprep.subr.bf16.mxu0 (!%p311_p9), %v1285_v20  ;;  %v1442_v30 = vshrl.u32 (!%p311_p9), %v440_v0, 7  ;;  %v1205_v32 = vld [vmem:[%s1619_s4 + $0x28] sm:$0xff] (!%p311_p9)   ;;  %s1288_s16 = smov (!%p311_p9), 64   ;;  %vm530_vm15 = vcmask (!%p311_p9), 523264   ;;  %v1206_v61 = vld [vmem:[%s1618_s3] sm:$0xff] (!%p311_p9)  }
  0x10   : > { %1100 = vmatpush3.bf16.msra.mxu1 (!%p311_p9), %v1200_v19  ;;  %1111 = vmatprep.mubr.msk.bf16.mxu1 (!%p311_p9), %vm1286_vm9, %v1285_v20  ;;  %v1207_v62 = vld [vmem:[%s1618_s3 + $0x8] sm:$0xff] (!%p311_p9)   ;;  %s1064_s24 = sshll.u32 (!%p311_p9), %s1362_s13, 4 }
  0x11   : > { %vm442_vm0 = vcmp.lt.s32.totalorder (!%p311_p9), %v1391_v2, 16  ;;  %1101 = vmatprep.subr.bf16.mxu1 (!%p311_p9), %v1285_v20  ;;  %v485_v34 = vadd.s32 (!%p311_p9), 8, %v1442_v30  ;;  %1095 = vmatprep.mubr.msk.bf16.mxu0 (!%p311_p9), %vm1286_vm9, %v1285_v20  ;;  %vm490_vm10 = vcmp.lt.s32.totalorder (!%p311_p9), %v1442_v30, 1  ;;  %vm503_vm13 = vcmp.lt.s32.totalorder (!%p311_p9), %v1442_v30, 7 }
  0x12   : > { %vm486_vm14 = vcmp.eq.s32.totalorder (!%p311_p9), %v1442_v30, 0  ;;  %1092 = vmatpush3.bf16.msra.mxu0 (!%p311_p9), %v1206_v61 }
  0x13   : > { %vm500_vm12 = vcmp.eq.s32.totalorder (!%p311_p9), %v485_v34, 15  ;;  %1093 = vmatprep.subr.bf16.mxu0 (!%p311_p9), %v1285_v20 }
  0x14   : > { %1102 = vmatpush3.bf16.msra.mxu1 (!%p311_p9), %v1201_v21 }
  0x15   : > { %s356_s21 = scalar_select %p355_p10, %s1362_s13, 1  ;;  %1103 = vmatprep.subr.bf16.mxu1 %v1285_v20 }
  0x16   : > { %1094 = vmatpush3.bf16.msra.mxu0 %v1207_v62 }
  0x17   : > { %s1393_s22 = sshll.u32 %s356_s21, 4  ;;  %1115 = vmatprep.subr.bf16.mxu0 %v1285_v20  ;;  %s1289_s21 = smov 96  }
  0x18   : > { %s369_s25 = scalar_lea.vmem %s1617_s2, %s1393_s22  ;;  %s364_s28 = scalar_lea.vmem %s1616_s1, %s1393_s22  ;;  %1104 = vmatpush3.bf16.msra.mxu1 %v1202_v22 }
  0x19   : > { %v1399_v3 = vld [vmem:[%s369_s25] sm:$0xff]  ;;  %v439_v4 = vld [vmem:[%s369_s25 + $0x8] sm:$0xff]  ;;  %1105 = vmatprep.subr.bf16.mxu1 %v1285_v20  ;;  %s359_s23 = scalar_lea.vmem %s1615_s0, %s1393_s22 }
  0x1a   : > { %v443_v5 = vand.u32 2147483647, %v1399_v3  ;;  %v444_v6 = vand.u32 2147483647, %v439_v4  ;;  %v373_v15 = vld [vmem:[%s364_s28 + $0x8] sm:$0xff]  ;;  %v372_v16 = vld [vmem:[%s364_s28] sm:$0xff]  ;;  %s1573_s28 = scalar_lea.hbm %s1624_s9, %s1064_s24 }
  0x1b   : > { %vm468_vm2 = vcmp.gt.f32.partialorder %v373_v15, 0.5  ;;  %vm467_vm3 = vcmp.gt.f32.partialorder %v372_v16, 0.5  ;;  %v374_v63 = vld [vmem:[%s359_s23] sm:$0xff]  ;;  %v375_v0 = vld [vmem:[%s359_s23 + $0x8] sm:$0xff]  ;;  %s353_s23 = sand.u32 1, %s1274_s10  }
  0x1c   : > { %v455_v7 = vsel %vm442_vm0, 0.0, %v443_v5  ;;  %v447_v8 = vsel %vm442_vm0, %v443_v5, 0.0  ;;  %v456_v9 = vsel %vm442_vm0, 0.0, %v444_v6  ;;  %v448_v10 = vsel %vm442_vm0, %v444_v6, 0.0  ;;  %1106 = vmatpush3.bf16.msra.mxu1 %v1203_v23  ;;  %s354_s25 = scalar_lea.vmem [#allocation2], %s353_s23  ;;  %s942_s13 = scalar_lea.sflag [#allocation3], %s353_s23 }
  0x1d   : > { %v457_v11 = vsel %vm393_vm1, %v455_v7, 0.0  ;;  %v449_v12 = vsel %vm393_vm1, %v447_v8, 0.0  ;;  %v460_v13 = vsel %vm393_vm1, %v456_v9, 0.0  ;;  %v452_v14 = vsel %vm393_vm1, %v448_v10, 0.0  ;;  %1107 = vmatprep.subr.bf16.mxu1 %v1285_v20  ;;  %s954_s26 = sshll.u32 %s354_s25, 4  ;;  %s1575_s26 = int_to_ptr.vmem [resolvable:$true] %s954_s26 }
  0x1e   : > { %458 = vadd.xlane.f32.xlu1 %v457_v11  ;;  %450 = vadd.xlane.f32.xlu0 %v449_v12  ;;  %v470_v17 = vsel %vm468_vm2, 1, %v1284_v1  ;;  %v469_v18 = vsel %vm467_vm3, 1, %v1284_v1  ;;  %v376_v1 = vpack.c.bf16 %v375_v0, %v374_v63  ;;  %vm631_vm2 = vcmp.lt.s32.totalorder %v1391_v2, 32  ;;  %s1220_s29 = scalar_lea.vmem %s1575_s26, 16 }
  0x1f   : > { %v686_v63 = vsub.s32 1, %v1442_v30  ;;  %vm939_vm3 = vcmask 24576   ;;  %p1221_p11 = scmp.ne.s32.totalorder %s1575_s26, %s1220_s29 }
  0x20   : > { %1108 = vmatpush3.bf16.msra.mxu1 %v1204_v28  ;;  %1096 = vmatmul.mubr.msk.bf16.vlgmr.msra.gmra.mrb[0].mxu0 %vm393_vm1, %v376_v1 }
  0x21   : > { %1109 = vmatprep.subr.bf16.mxu1 %v1285_v20  ;;  %1119 = vmatprep.mubr.msk.bf16.mxu0 %vm1286_vm9, %v1285_v20  ;;  %p1222_p12 = pnand %p1221_p11, %p1379_p5 }
  0x22   : > { %461 = vadd.xlane.f32.xlu1 %v460_v13  ;;  %453 = vadd.xlane.f32.xlu0 %v452_v14 }
  0x23   : > { %p1223_p13 = pneg %p1222_p12 }
  0x24   : > { %1110 = vmatpush3.bf16.msra.mxu1 %v1205_v32 }
  0x25   : > { %1135 = vmatprep.subr.bf16.mxu1 %v1285_v20 }
  0x33   : > { %475 = vperm.xlu1 %1189, %v470_v17  }
  0x38   : > { %472 = vperm.xlu0 %1188, %v469_v18  }
  0xab   : > { %v459_v24 = vpop.xlane.xlu1 %458  ;;  %v451_v25 = vpop.xlane.xlu0 %450 }
  0xac   : > { %v463_v33 = vsel %vm442_vm0, %v451_v25, %v459_v24 }
  0xad   : > { %vm465_vm7 = vcmp.eq.f32.partialorder %v463_v33, 0.0 }
  0xaf   : > { %v462_v26 = vpop.xlane.xlu1 %461  ;;  %v454_v27 = vpop.xlane.xlu0 %453 }
  0xb0   : > { %v464_v29 = vsel %vm442_vm0, %v454_v27, %v462_v26  ;;  %vm586_vm0 = vcmask 785408  }
  0xb1   : > { %vm466_vm4 = vcmp.eq.f32.partialorder %v464_v29, 0.0 }
  0xb3   : > { %v476_v31 = vpop.permute.xlu1 %475 }
  0xb4   : > { %vm478_vm5 = vcmp.eq.s32.totalorder %v476_v31, 1 }
  0xb5   : > { %vm480_vm6 = vmand %vm466_vm4, %vm478_vm5 }
  0xb6   : > { %v482_v35 = vsel %vm480_vm6, 1e-06, %v439_v4  ;;  %v1485_v4 = vld [vmem:[%s1623_s8] sm:$0xff] }
  0xb7   : > { %v473_v36 = vpop.permute.xlu0 %472  ;;  %v489_v37 = vrot.slane %v482_v35, 7  ;;  %v502_v39 = vrot.slane %v482_v35, 1  ;;  %v687_v1 = vrot.slane %v1485_v4, %v686_v63 }
  0xb8   : > { %vm477_vm8 = vcmp.eq.s32.totalorder %v473_v36, 1 }
  0xb9   : > { %vm479_vm11 = vmand %vm465_vm7, %vm477_vm8 }
  0xba   : > { %v481_v38 = vsel %vm479_vm11, 1e-06, %v1399_v3  ;;  %v548_v3 = vsub.s32 0, %v1442_v30 }
  0xbb   : > { %v488_v40 = vrot.slane %v481_v38, 7  ;;  %v501_v41 = vrot.slane %v481_v38, 1  ;;  %v1190_v42 = vpack.i.bf16 %v482_v35, %v481_v38 }
  0xbc   : > { %v549_v5 = vrot.slane %v1485_v4, %v548_v3 }
  0xbd   : > { %v492_v43 = vsel %vm490_vm10, %v489_v37, %v488_v40  ;;  %1191 = vrot.lane.b32.xlu1 %v1190_v42, %s1287_s14  ;;  %v504_v44 = vsel %vm503_vm13, %v501_v41, %v502_v39  ;;  %v505_v45 = vsel %vm503_vm13, %v502_v39, %v501_v41  ;;  %v491_v46 = vsel %vm490_vm10, %v488_v40, %v489_v37  ;;  %v1208_v42 = vld [vmem:[%s1620_s5] sm:$0xff]   ;;  %s1290_s14 = smov [#allocation2]  }
  0xbe   : > { %v511_v47 = vsel %vm500_vm12, 0.0, %v505_v45  ;;  %v497_v53 = vsel %vm486_vm14, 0.0, %v492_v43  ;;  %1116 = vmatpush3.bf16.msra.mxu0 %v1208_v42 }
  0xbf   : > { %v1195_v48 = vpack.i.bf16 %v511_v47, %v504_v44  ;;  %1117 = vmatprep.subr.bf16.mxu0 %v1285_v20  ;;  %v1209_v44 = vld [vmem:[%s1620_s5 + $0x8] sm:$0xff]  }
  0xc1   : > { %1196 = vrot.lane.b32.xlu1 %v1195_v48, %s1288_s16  ;;  %s1224_s16 = sshll.u32 %s1290_s14, 4  ;;  %s1225_s16 = int_to_ptr.vmem [resolvable:$false] %s1224_s16 }
  0xc2   : > { %1118 = vmatpush3.bf16.msra.mxu0 %v1209_v44  ;;  %s1226_s17 = scalar_lea.vmem %s1225_s16, 32  ;;  %p1227_p0 = scmp.lt.s32.totalorder %s1575_s26, %s1225_s16 }
  0xc3   : > { %1123 = vmatprep.subr.bf16.mxu0 %v1285_v20  ;;  %p1228_p1 = scmp.lt.s32.totalorder %s1226_s17, %s1220_s29 }
  0xc5   : > { %p1229_p2 = por %p1228_p1, %p1227_p0 }
  0xc7   : > { %p1230_p3 = pnand %p1229_p2, %p1223_p13 }
  0xf3   : > { %v431_v43 = vpop.f32.mrb[0].mxu0 }
  0xf4   : > { %v1097_v45 = vpop.f32.mrb[1].mxu0 }
 0x12f   : > { %v1192_v49 = vpop.permute.xlu1 %1191 }
 0x130   : > { %v1194_v50 = vunpack.i.h.bf16 %v1192_v49  ;;  %v1193_v51 = vunpack.i.l.bf16 %v1192_v49  ;;  %v1210_v49 = vld [vmem:[%s1621_s6] sm:$0xff]  }
 0x132   : > { %v528_v56 = vsel %vm393_vm1, %v497_v53, %v1193_v51  ;;  %v529_v57 = vsel %vm393_vm1, %v491_v46, %v1194_v50  ;;  %v434_v46 = vpop.f32.mrb[2].mxu0  ;;  %v1211_v50 = vld [vmem:[%s1621_s6 + $0x8] sm:$0xff]   ;;  %v1212_v51 = vld [vmem:[%s1621_s6 + $0x10] sm:$0xff]  }
 0x133   : > { %v1197_v52 = vpop.permute.xlu1 %1196  ;;  %v698_v47 = vpack.c.bf16 %v434_v46, %v431_v43  ;;  %v1098_v48 = vpop.f32.mrb[3].mxu0  ;;  %v1214_v43 = vld [vmem:[%s1622_s7] sm:$0xff]  }
 0x134   : > { %v1199_v54 = vunpack.i.h.bf16 %v1197_v52  ;;  %v1198_v55 = vunpack.i.l.bf16 %v1197_v52  ;;  %v1213_v52 = vld [vmem:[%s1621_s6 + $0x18] sm:$0xff]  }
 0x135   : > { %1120 = vmatmul.mubr.msk.bf16.vlgmr.msra.gmra.mrb[4].mxu0 %vm393_vm1, %v698_v47  ;;  %v1215_v47 = vld [vmem:[%s1622_s7 + $0x8] sm:$0xff]  }
 0x136   : > { %v531_v58 = vsel %vm530_vm15, %v528_v56, %v1198_v55  ;;  %v532_v59 = vsel %vm530_vm15, %v529_v57, %v1199_v54  ;;  %1131 = vmatprep.mubr.msk.bf16.mxu0 %vm1286_vm9, %v1285_v20  ;;  %1124 = vmatpush3.bf16.msra.mxu0 %v1210_v49 }
 0x137   : > { %v533_v60 = vpack.c.bf16 %v532_v59, %v531_v58  ;;  %1125 = vmatprep.subr.bf16.mxu0 %v1285_v20 }
 0x139   : > { %1112 = vmatmul.mubr.msk.bf16.vlgmr.msra.gmra.mrb[0].mxu1 %vm586_vm0, %v533_v60 }
 0x13a   : > { %1139 = vmatprep.mubr.msk.bf16.mxu1 %vm1286_vm9, %v1285_v20  ;;  %1126 = vmatpush3.bf16.msra.mxu0 %v1211_v50 }
 0x13b   : > { %1127 = vmatprep.subr.bf16.mxu0 %v1285_v20  ;;  %1136 = vmatpush3.bf16.msra.mxu1 %v1214_v43 }
 0x13c   : > { %1137 = vmatprep.subr.bf16.mxu1 %v1285_v20 }
 0x13e   : > { %1128 = vmatpush3.bf16.msra.mxu0 %v1212_v51 }
 0x13f   : > { %1129 = vmatprep.subr.bf16.mxu0 %v1285_v20  ;;  %1138 = vmatpush3.bf16.msra.mxu1 %v1215_v47  ;;  %v868_v20 = vmax.f32 %v1485_v4, 0.0 }
 0x142   : > { %1130 = vmatpush3.bf16.msra.mxu0 %v1213_v52 }
 0x20c   : > { %v624_v6 = vpop.f32.mrb[0].mxu1 }
 0x20d   : > { %v625_v7 = vadd.f32 %v624_v6, %v549_v5  ;;  %v1113_v8 = vpop.f32.mrb[1].mxu1 }
 0x20e   : > { %v627_v9 = vpop.f32.mrb[2].mxu1 }
 0x20f   : > { %v628_v10 = vadd.f32 %v627_v9, %v549_v5  ;;  %v1114_v11 = vpop.f32.mrb[3].mxu1  ;;  %v634_v12 = vsel %vm631_vm2, %v625_v7, 0.0  ;;  %v642_v15 = vsel %vm631_vm2, 0.0, %v625_v7  ;;  %v692_v5 = vsub.s32 2, %v1442_v30 }
 0x210   : > { %v636_v13 = vsel %vm530_vm15, %v634_v12, 0.0  ;;  %v644_v17 = vsel %vm530_vm15, %v642_v15, 0.0  ;;  %v705_v15 = vsub.s32 3, %v1442_v30 }
 0x211   : > { %637 = vadd.xlane.f32.xlu1 %v636_v13  ;;  %v635_v14 = vsel %vm631_vm2, %v628_v10, 0.0  ;;  %v643_v18 = vsel %vm631_vm2, 0.0, %v628_v10 }
 0x212   : > { %v639_v16 = vsel %vm530_vm15, %v635_v14, 0.0  ;;  %v647_v19 = vsel %vm530_vm15, %v643_v18, 0.0 }
 0x213   : > { %640 = vadd.xlane.f32.xlu0 %v639_v16  ;;  %v706_v16 = vrot.slane %v1485_v4, %v705_v15 }
 0x215   : > { %645 = vadd.xlane.f32.xlu1 %v644_v17  ;;  %v756_v17 = vpop.f32.mrb[4].mxu0 }
 0x216   : > { %v757_v18 = vadd.f32 %v756_v17, %v706_v16 }
 0x219   : > { %648 = vadd.xlane.f32.xlu1 %v647_v19  ;;  %v1121_v19 = vpop.f32.mrb[5].mxu0 }
 0x29e   : > { %v638_v21 = vpop.xlane.xlu1 %637 }
 0x2a0   : > { %v641_v25 = vpop.xlane.xlu0 %640 }
 0x2a2   : > { %v646_v22 = vpop.xlane.xlu1 %645 }
 0x2a3   : > { %v650_v23 = vsel %vm631_vm2, %v638_v21, %v646_v22  ;;  %v759_v21 = vpop.f32.mrb[6].mxu0  ;;  %v763_v22 = vmax.f32 %v757_v18, 0.0 }
 0x2a4   : > { %v652_v24 = vmul.f32 0.03125, %v650_v23  ;;  %v760_v23 = vadd.f32 %v759_v21, %v706_v16 }
 0x2a6   : > { %v654_v26 = vsub.f32 %v625_v7, %v652_v24  ;;  %v649_v27 = vpop.xlane.xlu1 %648  ;;  %v693_v7 = vrot.slane %v1485_v4, %v692_v5  ;;  %v1122_v24 = vpop.f32.mrb[7].mxu0 }
 0x2a7   : > { %v651_v28 = vsel %vm631_vm2, %v641_v25, %v649_v27  ;;  %v844_v25 = vsel %vm393_vm1, %v763_v22, 0.0 }
 0x2a8   : > { %v653_v29 = vmul.f32 0.03125, %v651_v28  ;;  %v656_v31 = vmul.f32 %v654_v26, %v654_v26 }
 0x2aa   : > { %v655_v32 = vsub.f32 %v628_v10, %v653_v29  ;;  %v658_v33 = vsel %vm631_vm2, %v656_v31, 0.0  ;;  %v666_v34 = vsel %vm631_vm2, 0.0, %v656_v31 }
 0x2ab   : > { %v660_v35 = vsel %vm530_vm15, %v658_v33, 0.0  ;;  %v668_v36 = vsel %vm530_vm15, %v666_v34, 0.0 }
 0x2ac   : > { %661 = vadd.xlane.f32.xlu1 %v660_v35  ;;  %669 = vadd.xlane.f32.xlu0 %v668_v36  ;;  %v657_v37 = vmul.f32 %v655_v32, %v655_v32 }
 0x2ae   : > { %v659_v38 = vsel %vm631_vm2, %v657_v37, 0.0  ;;  %v667_v40 = vsel %vm631_vm2, 0.0, %v657_v37 }
 0x2af   : > { %v663_v39 = vsel %vm530_vm15, %v659_v38, 0.0  ;;  %v671_v41 = vsel %vm530_vm15, %v667_v40, 0.0 }
 0x2b0   : > { %664 = vadd.xlane.f32.xlu1 %v663_v39 }
 0x2b4   : > { %672 = vadd.xlane.f32.xlu1 %v671_v41 }
 0x339   : > { %v662_v53 = vpop.xlane.xlu1 %661  ;;  %v670_v54 = vpop.xlane.xlu0 %669 }
 0x33a   : > { %v674_v55 = vsel %vm631_vm2, %v662_v53, %v670_v54 }
 0x33b   : > { %v676_v56 = vmul.f32 0.03125, %v674_v55  ;;  %v869_v55 = vmul.f32 24.0, %v868_v20 }
 0x33d   : > { %v678_v57 = vadd.f32 1e-06, %v676_v56  ;;  %v665_v58 = vpop.xlane.xlu1 %664  ;;  %v871_v56 = vrot.slane %v869_v55, 3 }
 0x33f   : > { %1216 = vrsqrt.f32 %v678_v57 }
 0x341   : > { %v673_v59 = vpop.xlane.xlu1 %672 }
 0x342   : > { %v675_v60 = vsel %vm631_vm2, %v665_v58, %v673_v59 }
 0x343   : > { %v677_v61 = vmul.f32 0.03125, %v675_v60 }
 0x345   : > { %v679_v62 = vadd.f32 1e-06, %v677_v61 }
 0x347   : > { %1218 = vrsqrt.f32 %v679_v62  ;;  %v894_v62 = vrot.slane %v1485_v4, 4 }
 0x349   : > { %v1217_v0 = vpop.eup %1216 }
 0x34a   : > { %v682_v3 = vmul.f32 %v1217_v0, %v654_v26  ;;  %v764_v26 = vmax.f32 %v760_v23, 0.0 }
 0x34c   : > { %v688_v6 = vmul.f32 %v687_v1, %v682_v3  ;;  %v845_v27 = vsel %vm393_vm1, %v764_v26, 0.0 }
 0x34d   : > { %v846_v28 = vadd.f32 %v845_v27, %v844_v25 }
 0x34e   : > { %v694_v11 = vadd.f32 %v693_v7, %v688_v6 }
 0x34f   : > { %v847_v29 = vrot.slane %v846_v28, 4 }
 0x350   : > { %v696_v12 = vmax.f32 %v694_v11, 0.0 }
 0x351   : > { %v1219_v8 = vpop.eup %1218  ;;  %v848_v37 = vadd.f32 %v847_v29, %v846_v28 }
 0x352   : > { %v683_v9 = vmul.f32 %v1219_v8, %v655_v32 }
 0x353   : > { %v849_v41 = vrot.slane %v848_v37, 2 }
 0x354   : > { %v689_v10 = vmul.f32 %v687_v1, %v683_v9 }
 0x355   : > { %v850_v46 = vadd.f32 %v849_v41, %v848_v37 }
 0x356   : > { %v695_v2 = vadd.f32 %v693_v7, %v689_v10 }
 0x357   : > { %v851_v50 = vrot.slane %v850_v46, 1 }
 0x358   : > { %v697_v13 = vmax.f32 %v695_v2, 0.0 }
 0x359   : > { %v852_v53 = vadd.f32 %v851_v50, %v850_v46 }
 0x35a   : > { %v765_v14 = vpack.c.bf16 %v697_v13, %v696_v12 }
 0x35c   : > { %1132 = vmatmul.mubr.msk.bf16.vlgmr.msra.gmra.mrb[8].mxu0 %vm530_vm15, %v765_v14 }
 0x42f   : > { %v835_v31 = vpop.f32.mrb[8].mxu0 }
 0x430   : > { %v836_v32 = vadd.f32 %v835_v31, %v706_v16  ;;  %v1133_v33 = vpop.f32.mrb[9].mxu0 }
 0x431   : > { %v838_v30 = vpop.f32.mrb[10].mxu0 }
 0x432   : > { %v842_v34 = vmax.f32 %v836_v32, 0.0  ;;  %v839_v35 = vadd.f32 %v838_v30, %v706_v16  ;;  %v1134_v36 = vpop.f32.mrb[11].mxu0 }
 0x434   : > { %v843_v38 = vmax.f32 %v839_v35, 0.0  ;;  %v853_v39 = vsel %vm530_vm15, %v842_v34, 0.0 }
 0x436   : > { %v854_v40 = vsel %vm530_vm15, %v843_v38, 0.0 }
 0x437   : > { %v855_v42 = vadd.f32 %v854_v40, %v853_v39 }
 0x439   : > { %v856_v44 = vrot.slane %v855_v42, 4 }
 0x43b   : > { %v857_v45 = vadd.f32 %v856_v44, %v855_v42 }
 0x43d   : > { %v858_v48 = vrot.slane %v857_v45, 2 }
 0x43f   : > { %v859_v49 = vadd.f32 %v858_v48, %v857_v45 }
 0x441   : > { %v860_v51 = vrot.slane %v859_v49, 1 }
 0x443   : > { %v861_v52 = vadd.f32 %v860_v51, %v859_v49 }
 0x445   : > { %864 = vrot.lane.b32.xlu0 %v861_v52, %s1289_s21  ;;  %v862_v54 = vadd.f32 %v861_v52, %v852_v53 }
 0x4b7   : > { %v865_v57 = vpop.permute.xlu0 %864 }
 0x4b8   : > { %v867_v58 = vadd.f32 %v865_v57, %v862_v54 }
 0x4ba   : > { %v873_v59 = vadd.f32 %v871_v56, %v867_v58 }
 0x4bc   : > { %v875_v60 = vmul.f32 0.013888889, %v873_v59 }
 0x4be   : > { %v876_v61 = vpack.c.bf16 %v875_v60, %v875_v60 }
 0x4c0   : > { %1140 = vmatmul.mubr.msk.bf16.vlgmr.msra.gmra.mrb[4].mxu1 %vm393_vm1, %v876_v61 }
 0x593   : > { %v933_v63 = vpop.f32.mrb[4].mxu1 }
 0x594   : > { %v934_v0 = vadd.f32 %v933_v63, %v894_v62  ;;  %v1141_v1 = vpop.f32.mrb[5].mxu1 }
 0x595   : > { %v936_v3 = vpop.f32.mrb[6].mxu1 }
 0x596   : > { %v1142_v4 = vpop.f32.mrb[7].mxu1  ;;  %940 = vst.msk [vmem:[%s354_s25] sm:$0x1] %vm939_vm3, %v934_v0 }
 0x597   : > { %1233 = shalt.err (!%p1230_p3)
}
 0x598   : > { %s1234_s21 = scalar_lea.hbm %s1573_s28, 16  ;;  %s1238_s25 = scalar_lea.hbm %s1624_s9, 32 }
 0x599   : > { %p1235_p4 = scmp.ne.s32.totalorder %s1573_s28, %s1234_s21  ;;  %p1239_p9 = scmp.lt.u32.totalorder %s1573_s28, %s1624_s9 }
 0x59a   : > { %p1240_p10 = scmp.lt.u32.totalorder %s1238_s25, %s1234_s21  ;;  %p1242_p12 = scmp.lt.u32.totalorder %s1234_s21, %s1573_s28 }
 0x59b   : > { %p1236_p7 = pnand %p1235_p4, %p1379_p5 }
 0x59c   : > { %p1241_p11 = por %p1240_p10, %p1239_p9 }
 0x59d   : > { %p1237_p8 = pneg %p1236_p7 }
 0x59e   : > { %p1243_p13 = por %p1242_p12, %p1241_p11 }
 0x5a0   : > { %p1244_p0 = pnand %p1243_p13, %p1237_p8 }
 0x5a2   : > { %1247 = shalt.err (!%p1244_p0)
}
 0x5a3   : > { %1143 = dma.vmem_to_hbm [thread:$0]  (%p1379_p5), %s1575_s26, 16, %s1573_s28, %s942_s13  }
 0x5a4 PF: > { %p1149_p1 = scmp.ge.s32.totalorder %s1282_s12, 2  ;;  %s966_s29 = sand.u32 1, %s1270_s30  }
 0x5a5   : > { %s967_s14 = scalar_lea.sflag [#allocation3], %s966_s29 }
 0x5a6   : > { %p1146_p2 = pnand %p1149_p1, %p1383_p6 }
 0x5a8   : > { %1265 = dma.done.wait (!%p1146_p2), %s967_s14, 16  }
 0x5a9   : > { %1267 = vsyncadd (!%p1146_p2), %s967_s14, 4294967280  ;;  %p19_p3 = scmp.ge.s32.totalorder %s1366_s15, 4   ;;  %s1627_s30 = smov %s1274_s10 }
 0x5aa   : > { %s1628_s10 = smov %s1278_s11  ;;  %s1629_s11 = smov %s1377_s18 }
 0x5ab   : > { %s1630_s12 = smov %s1366_s15  ;;  %21 = sbr.rel (!%p19_p3) target bundleno = 3 (0x3), region = 97 }
 0x5b2   :  { %971 = vsyncpa [#allocation3], 1 }
 0x5b3   :  { %973 = vsyncpa [#allocation3 + $0x1], 1 }

</bundles_post_ra>
